<compile_context>
chip_gen: v5e
topology: v5e:2x2
jax: 0.10.0
libtpu: 0.0.40
codegen_flags: <defaults>
</compile_context>

<pallas_src>
import functools

import jax
import jax.numpy as jnp
import numpy as np
from jax.experimental import pallas as pl
from jax.experimental.pallas import tpu as pltpu


_BASE = 128  # lane margin in front of the flattened image data (covers every tap offset)


def _round_up(x, m):
    return (x + m - 1) // m * m


# ----------------------------------------------------------------------------
# Fused BasicBlock kernel (one group of G images per grid step)
# ----------------------------------------------------------------------------
def _basic_block_kernel(x_ref, w1_ref, w2_ref, proj_ref, shift_ref, mask_ref,
                        o_ref, y1_ref, *, mtot, offs1, offs2, off_sc):
    """x_ref   : (Ce, _BASE + mtot + _BASE)  flattened grouped input (+ lane margins)
       w1_ref  : (T1, Cout, Ce)   conv1 per-tap weights (bn1 scale folded)
       w2_ref  : (9,  Cout, Cout) conv2 per-tap weights (bn2 scale folded)
       proj_ref: (Cout, Ce)       shortcut channel projection
       shift_ref:(Cout, 2)        folded bn1 / bn2 shifts (columns)
       mask_ref: (1, mtot)        1.0 at valid interior grid lanes, 0.0 elsewhere
       o_ref   : (Cout, mtot)     lane-dense output slab
       y1_ref  : (Cout, _BASE + mtot + _BASE)  VMEM scratch for the conv1 output
    """
    # ---- conv1 (+ folded bn1) + relu, as per-tap MXU matmuls ----
    acc1 = jnp.dot(w1_ref[0], x_ref[:, _BASE + offs1[0]:_BASE + offs1[0] + mtot],
                   preferred_element_type=jnp.float32)
    for t in range(1, len(offs1)):
        off = offs1[t]
        acc1 = acc1 + jnp.dot(w1_ref[t], x_ref[:, _BASE + off:_BASE + off + mtot],
                              preferred_element_type=jnp.float32)
    # Border mask == conv2's zero padding (and zeroes the per-image lane gaps).
    y1 = jnp.maximum(acc1 + shift_ref[:, 0:1], 0.0) * mask_ref[...]
    y1_ref[:, _BASE:_BASE + mtot] = y1
    # NOTE: the scratch margins are intentionally never zeroed -- reads that land
    # there only feed border output lanes that the wrapper discards.

    # ---- conv2 (+ folded bn2) + shortcut + relu as one accumulation chain ----
    acc2 = jnp.dot(proj_ref[...],
                   x_ref[:, _BASE + off_sc:_BASE + off_sc + mtot],
                   preferred_element_type=jnp.float32)
    for t in range(9):
        off = offs2[t]
        acc2 = acc2 + jnp.dot(w2_ref[t], y1_ref[:, _BASE + off:_BASE + off + mtot],
                              preferred_element_type=jnp.float32)
    o_ref[...] = jnp.maximum(acc2 + shift_ref[:, 1:2], 0.0)


# ----------------------------------------------------------------------------
# BasicBlock module (parameters + forward)
# ----------------------------------------------------------------------------
class BasicBlockPallas:
    expansion = 1
    BN_EPS = 1e-5

    def __init__(self, key, in_planes, planes, stride=1, option="A"):
        assert option == "A", "only option A implemented (CIFAR ResNet)"
        assert stride in (1, 2)
        if stride == 1:
            assert in_planes == planes, "stride-1 block with channel change unsupported"
        else:
            # option-A shortcut layout assumption (perf-review correctness concern)
            assert planes == 2 * in_planes, "option-A shortcut assumes planes == 2*in_planes"
        assert planes % 8 == 0, "planes must be a multiple of 8 (sublane tile)"
        self.in_planes = in_planes
        self.planes = planes
        self.stride = stride

        ks = jax.random.split(key, 8)
        # conv weights stored as HWIO (3, 3, Cin, Cout)
        self.w1 = 0.1 * jax.random.normal(ks[0], (3, 3, in_planes, planes), jnp.float32)
        self.w2 = 0.1 * jax.random.normal(ks[1], (3, 3, planes, planes), jnp.float32)
        # batchnorm parameters + running stats (deterministic, inference form)
        self.g1 = 1.0 + 0.1 * jax.random.normal(ks[2], (planes,), jnp.float32)
        self.b1 = 0.1 * jax.random.normal(ks[3], (planes,), jnp.float32)
        self.m1 = 0.05 * jax.random.normal(ks[4], (planes,), jnp.float32)
        self.v1 = 1.0 + 0.1 * jax.random.uniform(ks[5], (planes,), jnp.float32)
        self.g2 = 1.0 + 0.1 * jax.random.normal(ks[6], (planes,), jnp.float32)
        self.b2 = 0.1 * jax.random.normal(ks[7], (planes,), jnp.float32)
        self.m2 = jnp.zeros((planes,), jnp.float32)
        self.v2 = jnp.ones((planes,), jnp.float32)

    @staticmethod
    def _fold_bn(gamma, beta, mean, var, eps):
        scale = gamma / jnp.sqrt(var + eps)
        shift = beta - mean * scale
        return scale, shift

    @staticmethod
    def _pick_group(n, limg, max_lanes=2048, max_g=8):
        """Largest divisor of n (capped) whose packed M = g*limg stays vreg-friendly."""
        best = 1
        for g in range(1, min(n, max_g) + 1):
            if n % g == 0 and g * limg <= max_lanes:
                best = g
        return best

    def __call__(self, x_nchw):
        x = x_nchw.astype(jnp.float32)
        n, cin, h, w = x.shape
        assert cin == self.in_planes
        s = self.stride
        cout = self.planes
        assert h % s == 0 and w % s == 0
        ho, wo = h // s, w // s
        hm, wm = ho + 2, wo + 2               # conv2 / mid grid (1-pixel halo)
        lm = hm * wm                          # flattened per-image grid length
        limg = _round_up(lm, 128)             # 128-aligned per-image lane segment

        # ---- fold BN (inference form) into per-channel scale/shift ----
        s1, sh1 = self._fold_bn(self.g1, self.b1, self.m1, self.v1, self.BN_EPS)
        s2, sh2 = self._fold_bn(self.g2, self.b2, self.m2, self.v2, self.BN_EPS)

        # ---- flattened per-image input (channels, lm) + conv1 taps + shortcut ----
        xpad = jnp.pad(x, ((0, 0), (0, 0), (1, 1), (1, 1)))
        if s == 1:
            ce_raw = cin
            xi = xpad.reshape(n, cin, lm)
            w1t = (jnp.transpose(self.w1, (0, 1, 3, 2)).reshape(9, cout, cin)
                   * s1[None, :, None])
            offs1 = tuple((dy - 1) * wm + (dx - 1)
                          for dy in range(3) for dx in range(3))
            proj = jnp.eye(cout, cin, dtype=jnp.float32)          # identity shortcut
            off_sc = 0
        else:
            # Dense parity-packed input: channel (ph, pw, ci) at grid (r, c) holds
            # xpad[ci, 2r+ph, 2c+pw]; stride-2 conv1 becomes 4 "super-tap" matmuls
            # and the option-A shortcut is channel group (1,1,·) at offset -(wm+1).
            ce_raw = 4 * cin
            hp2, wp2 = (h + 2) // 2, (w + 2) // 2
            z = xpad.reshape(n, cin, hp2, 2, wp2, 2)
            z = jnp.transpose(z, (0, 3, 5, 1, 2, 4)).reshape(n, ce_raw, hp2, wp2)
            z = jnp.pad(z, ((0, 0), (0, 0), (0, hm - hp2), (0, wm - wp2)))
            xi = z.reshape(n, ce_raw, lm)

            taps, off_list = [], []
            for ry in range(2):
                for rx in range(2):
                    wt = jnp.zeros((cout, ce_raw), jnp.float32)
                    for ph in range(2):
                        for pw in range(2):
                            dy, dx = 2 * ry + ph, 2 * rx + pw
                            if dy < 3 and dx < 3:
                                col = (ph * 2 + pw) * cin
                                wt = wt.at[:, col:col + cin].set(
                                    self.w1[dy, dx].T * s1[:, None])
                    taps.append(wt)
                    off_list.append((ry - 1) * wm + (rx - 1))
            w1t = jnp.stack(taps)                                  # (4, Cout, 4*Cin)
            offs1 = tuple(off_list)

            pad_ch = cout // 4                                     # option 'A'
            proj_np = np.zeros((cout, ce_raw), np.float32)
            proj_np[pad_ch + np.arange(cin), 3 * cin + np.arange(cin)] = 1.0
            proj = jnp.asarray(proj_np)
            off_sc = -(wm + 1)

        # pad channel count to a multiple of 8 (sublane tile) for the matmuls
        ce = _round_up(ce_raw, 8)
        if ce != ce_raw:
            xi = jnp.pad(xi, ((0, 0), (0, ce - ce_raw), (0, 0)))
            w1t = jnp.pad(w1t, ((0, 0), (0, 0), (0, ce - ce_raw)))
            proj = jnp.pad(proj, ((0, 0), (0, ce - ce_raw)))

        # ---- conv2 taps (bn2 scale folded) ----
        w2t = (jnp.transpose(self.w2, (0, 1, 3, 2)).reshape(9, cout, cout)
               * s2[None, :, None])
        offs2 = tuple((dy - 1) * wm + (dx - 1) for dy in range(3) for dx in range(3))
        shifts = jnp.stack([sh1, sh2], axis=1)                     # (Cout, 2)

        # ---- pack a group of G images into the matmul M (lane) dimension ----
        g = self._pick_group(n, limg)
        ng = n // g
        mtot = g * limg
        xi = jnp.pad(xi, ((0, 0), (0, 0), (0, limg - lm)))         # per-image lane pad
        xg = (xi.reshape(ng, g, ce, limg).transpose(0, 2, 1, 3)
                .reshape(ng, ce, mtot))
        xg = jnp.pad(xg, ((0, 0), (0, 0), (_BASE, _BASE)))         # lane margins

        # interior mask (also zeroes the per-image lane gap [lm, limg))
        m2d = np.zeros((hm, wm), np.float32)
        m2d[1:ho + 1, 1:wo + 1] = 1.0
        mimg = np.zeros((limg,), np.float32)
        mimg[:lm] = m2d.ravel()
        mask = jnp.asarray(np.tile(mimg, g)[None, :])              # (1, mtot)

        kernel = functools.partial(_basic_block_kernel, mtot=mtot, offs1=offs1,
                                   offs2=offs2, off_sc=off_sc)
        out = pl.pallas_call(
            kernel,
            out_shape=jax.ShapeDtypeStruct((ng, cout, mtot), jnp.float32),
            grid=(ng,),
            in_specs=[
                pl.BlockSpec((None, ce, mtot + 2 * _BASE), lambda b: (b, 0, 0)),
                pl.BlockSpec(w1t.shape, lambda b: (0, 0, 0)),
                pl.BlockSpec(w2t.shape, lambda b: (0, 0, 0)),
                pl.BlockSpec(proj.shape, lambda b: (0, 0)),
                pl.BlockSpec(shifts.shape, lambda b: (0, 0)),
                pl.BlockSpec(mask.shape, lambda b: (0, 0)),
            ],
            out_specs=pl.BlockSpec((None, cout, mtot), lambda b: (b, 0, 0)),
            scratch_shapes=[pltpu.VMEM((cout, mtot + 2 * _BASE), jnp.float32)],
            compiler_params=pltpu.CompilerParams(dimension_semantics=("parallel",)),
        )(xg, w1t, w2t, proj, shifts, mask)

        # ---- un-flatten: (NG, Cout, G*limg) -> NCHW interior ----
        out = (out.reshape(ng, cout, g, limg).transpose(0, 2, 1, 3)
                  .reshape(n, cout, limg)[:, :, :lm]
                  .reshape(n, cout, hm, wm)[:, :, 1:ho + 1, 1:wo + 1])
        return out


# ----------------------------------------------------------------------------
# Pure-JAX reference (same semantics) for a correctness check
# ----------------------------------------------------------------------------
def reference_block(block: BasicBlockPallas, x_nchw):
    def conv(x, w, stride):
        return jax.lax.conv_general_dilated(
            x, w, (stride, stride), ((1, 1), (1, 1)),
            dimension_numbers=("NCHW", "HWIO", "NCHW"))

    def bn(x, g, b, m, v):
        return (x - m[None, :, None, None]) / jnp.sqrt(v[None, :, None, None]
                                                       + block.BN_EPS) \
            * g[None, :, None, None] + b[None, :, None, None]

    out = jax.nn.relu(bn(conv(x_nchw, block.w1, block.stride),
                         block.g1, block.b1, block.m1, block.v1))
    out = bn(conv(out, block.w2, 1), block.g2, block.b2, block.m2, block.v2)
    if block.stride != 1 or block.in_planes != block.planes:
        pad = block.planes // 4
        sc = jnp.pad(x_nchw[:, :, ::2, ::2], ((0, 0), (pad, pad), (0, 0), (0, 0)))
    else:
        sc = x_nchw
    return jax.nn.relu(out + sc)


# ----------------------------------------------------------------------------
if __name__ == "__main__":
    key = jax.random.PRNGKey(0)
    k_x, k_p, k_x2, k_p2 = jax.random.split(key, 4)

    # Case 1: downsampling block, option-A shortcut (stride 2, 4 -> 8 channels).
    in_planes, planes, stride = 4, 8, 2
    x = jax.random.normal(k_x, (2, in_planes, 16, 16), jnp.float32)
    block = BasicBlockPallas(k_p, in_planes, planes, stride=stride, option="A")
    out = jax.block_until_ready(block(x))
    ref = jax.block_until_ready(reference_block(block, x))
    np.testing.assert_allclose(np.asarray(out), np.asarray(ref),
                               rtol=5e-4, atol=5e-4)
    assert out.shape == (2, planes, 8, 8)

    # Case 2: identity block (stride 1, same channel count).
    block2 = BasicBlockPallas(k_p2, 8, 8, stride=1, option="A")
    x2 = jax.random.normal(k_x2, (2, 8, 16, 16), jnp.float32)
    out2 = jax.block_until_ready(block2(x2))
    ref2 = jax.block_until_ready(reference_block(block2, x2))
    np.testing.assert_allclose(np.asarray(out2), np.asarray(ref2),
                               rtol=5e-4, atol=5e-4)
    assert out2.shape == (2, 8, 16, 16)

    print("KERNEL_OK")
</pallas_src>

<mosaic_0001>
module attributes {stable_mosaic.version = 11 : i64} {
  func.func @_basic_block_kernel(%arg0: i32, %arg1: memref<1x16x512xf32, #tpu.memory_space<vmem>>, %arg2: memref<4x8x16xf32, #tpu.memory_space<vmem>>, %arg3: memref<9x8x8xf32, #tpu.memory_space<vmem>>, %arg4: memref<8x16xf32, #tpu.memory_space<vmem>>, %arg5: memref<8x2xf32, #tpu.memory_space<vmem>>, %arg6: memref<1x256xf32, #tpu.memory_space<vmem>>, %arg7: memref<1x8x256xf32, #tpu.memory_space<vmem>>, %arg8: memref<8x512xf32, #tpu.memory_space<vmem>>) attributes {dimension_semantics = [#tpu.dimension_semantics<parallel>], iteration_bounds = array<i64: 1>, scalar_prefetch = 0 : i64, scratch_operands = 1 : i64, tpu.core_type = #tpu.core_type<tc>, window_params = [{transform_indices = @transform_0, window_bounds = array<i64: 1, 16, 512>}, {pipeline_mode = #tpu.pipeline_mode<synchronous>, transform_indices = @transform_1, window_bounds = array<i64: 4, 8, 16>}, {pipeline_mode = #tpu.pipeline_mode<synchronous>, transform_indices = @transform_2, window_bounds = array<i64: 9, 8, 8>}, {pipeline_mode = #tpu.pipeline_mode<synchronous>, transform_indices = @transform_3, window_bounds = array<i64: 8, 16>}, {pipeline_mode = #tpu.pipeline_mode<synchronous>, transform_indices = @transform_4, window_bounds = array<i64: 8, 2>}, {pipeline_mode = #tpu.pipeline_mode<synchronous>, transform_indices = @transform_5, window_bounds = array<i64: 1, 256>}, {transform_indices = @transform_6, window_bounds = array<i64: 1, 8, 256>}]} {
    %c0 = arith.constant 0 : index
    %c0_0 = arith.constant 0 : index
    %c0_1 = arith.constant 0 : index
    %0 = vector.load %arg2[%c0, %c0_0, %c0_1] : memref<4x8x16xf32, #tpu.memory_space<vmem>>, vector<1x8x16xf32>
    %1 = vector.shape_cast %0 : vector<1x8x16xf32> to vector<8x16xf32>
    %c0_2 = arith.constant 0 : index
    %c0_3 = arith.constant 0 : index
    %c117 = arith.constant 117 : index
    %2 = vector.load %arg1[%c0_2, %c0_3, %c117] : memref<1x16x512xf32, #tpu.memory_space<vmem>>, vector<1x16x256xf32>
    %3 = vector.shape_cast %2 : vector<1x16x256xf32> to vector<16x256xf32>
    %cst = arith.constant dense<0.000000e+00> : vector<8x256xf32>
    %4 = tpu.matmul %1, %3, %cst {dimension_numbers = #tpu.dot_dimension_numbers<[1], [0], [0], [1], [0, 0, 1, 1], [], []>} : vector<8x16xf32>, vector<16x256xf32>, vector<8x256xf32> -> vector<8x256xf32>
    %c1 = arith.constant 1 : index
    %c0_4 = arith.constant 0 : index
    %c0_5 = arith.constant 0 : index
    %5 = vector.load %arg2[%c1, %c0_4, %c0_5] : memref<4x8x16xf32, #tpu.memory_space<vmem>>, vector<1x8x16xf32>
    %6 = vector.shape_cast %5 : vector<1x8x16xf32> to vector<8x16xf32>
    %c0_6 = arith.constant 0 : index
    %c0_7 = arith.constant 0 : index
    %c118 = arith.constant 118 : index
    %7 = vector.load %arg1[%c0_6, %c0_7, %c118] : memref<1x16x512xf32, #tpu.memory_space<vmem>>, vector<1x16x256xf32>
    %8 = vector.shape_cast %7 : vector<1x16x256xf32> to vector<16x256xf32>
    %cst_8 = arith.constant dense<0.000000e+00> : vector<8x256xf32>
    %9 = tpu.matmul %6, %8, %cst_8 {dimension_numbers = #tpu.dot_dimension_numbers<[1], [0], [0], [1], [0, 0, 1, 1], [], []>} : vector<8x16xf32>, vector<16x256xf32>, vector<8x256xf32> -> vector<8x256xf32>
    %10 = arith.addf %4, %9 : vector<8x256xf32>
    %c2 = arith.constant 2 : index
    %c0_9 = arith.constant 0 : index
    %c0_10 = arith.constant 0 : index
    %11 = vector.load %arg2[%c2, %c0_9, %c0_10] : memref<4x8x16xf32, #tpu.memory_space<vmem>>, vector<1x8x16xf32>
    %12 = vector.shape_cast %11 : vector<1x8x16xf32> to vector<8x16xf32>
    %c0_11 = arith.constant 0 : index
    %c0_12 = arith.constant 0 : index
    %c127 = arith.constant 127 : index
    %13 = vector.load %arg1[%c0_11, %c0_12, %c127] : memref<1x16x512xf32, #tpu.memory_space<vmem>>, vector<1x16x256xf32>
    %14 = vector.shape_cast %13 : vector<1x16x256xf32> to vector<16x256xf32>
    %cst_13 = arith.constant dense<0.000000e+00> : vector<8x256xf32>
    %15 = tpu.matmul %12, %14, %cst_13 {dimension_numbers = #tpu.dot_dimension_numbers<[1], [0], [0], [1], [0, 0, 1, 1], [], []>} : vector<8x16xf32>, vector<16x256xf32>, vector<8x256xf32> -> vector<8x256xf32>
    %16 = arith.addf %10, %15 : vector<8x256xf32>
    %c3 = arith.constant 3 : index
    %c0_14 = arith.constant 0 : index
    %c0_15 = arith.constant 0 : index
    %17 = vector.load %arg2[%c3, %c0_14, %c0_15] : memref<4x8x16xf32, #tpu.memory_space<vmem>>, vector<1x8x16xf32>
    %18 = vector.shape_cast %17 : vector<1x8x16xf32> to vector<8x16xf32>
    %c0_16 = arith.constant 0 : index
    %c0_17 = arith.constant 0 : index
    %c128 = arith.constant 128 : index
    %19 = vector.load %arg1[%c0_16, %c0_17, %c128] : memref<1x16x512xf32, #tpu.memory_space<vmem>>, vector<1x16x256xf32>
    %20 = vector.shape_cast %19 : vector<1x16x256xf32> to vector<16x256xf32>
    %cst_18 = arith.constant dense<0.000000e+00> : vector<8x256xf32>
    %21 = tpu.matmul %18, %20, %cst_18 {dimension_numbers = #tpu.dot_dimension_numbers<[1], [0], [0], [1], [0, 0, 1, 1], [], []>} : vector<8x16xf32>, vector<16x256xf32>, vector<8x256xf32> -> vector<8x256xf32>
    %22 = arith.addf %16, %21 : vector<8x256xf32>
    %c0_19 = arith.constant 0 : index
    %c0_20 = arith.constant 0 : index
    %23 = vector.load %arg5[%c0_19, %c0_20] : memref<8x2xf32, #tpu.memory_space<vmem>>, vector<8x1xf32>
    %24 = vector.broadcast %23 : vector<8x1xf32> to vector<8x256xf32>
    %25 = arith.addf %22, %24 : vector<8x256xf32>
    %cst_21 = arith.constant 0.000000e+00 : f32
    %26 = vector.broadcast %cst_21 : f32 to vector<8x256xf32>
    %27 = arith.maximumf %25, %26 : vector<8x256xf32>
    %c0_22 = arith.constant 0 : index
    %c0_23 = arith.constant 0 : index
    %28 = vector.load %arg6[%c0_22, %c0_23] : memref<1x256xf32, #tpu.memory_space<vmem>>, vector<1x256xf32>
    %29 = vector.broadcast %28 : vector<1x256xf32> to vector<8x256xf32>
    %30 = arith.mulf %27, %29 : vector<8x256xf32>
    %c0_24 = arith.constant 0 : index
    %c128_25 = arith.constant 128 : index
    %31 = vector.load %arg8[%c0_24, %c128_25] : memref<8x512xf32, #tpu.memory_space<vmem>>, vector<8x256xf32>
    tpu.vector_store %arg8[%c0_24, %c128_25], %30 {strides = array<i32>} : memref<8x512xf32, #tpu.memory_space<vmem>>, vector<8x256xf32>,
    %c0_26 = arith.constant 0 : index
    %c0_27 = arith.constant 0 : index
    %32 = vector.load %arg4[%c0_26, %c0_27] : memref<8x16xf32, #tpu.memory_space<vmem>>, vector<8x16xf32>
    %c0_28 = arith.constant 0 : index
    %c0_29 = arith.constant 0 : index
    %c117_30 = arith.constant 117 : index
    %33 = vector.load %arg1[%c0_28, %c0_29, %c117_30] : memref<1x16x512xf32, #tpu.memory_space<vmem>>, vector<1x16x256xf32>
    %34 = vector.shape_cast %33 : vector<1x16x256xf32> to vector<16x256xf32>
    %cst_31 = arith.constant dense<0.000000e+00> : vector<8x256xf32>
    %35 = tpu.matmul %32, %34, %cst_31 {dimension_numbers = #tpu.dot_dimension_numbers<[1], [0], [0], [1], [0, 0, 1, 1], [], []>} : vector<8x16xf32>, vector<16x256xf32>, vector<8x256xf32> -> vector<8x256xf32>
    %c0_32 = arith.constant 0 : index
    %c0_33 = arith.constant 0 : index
    %c0_34 = arith.constant 0 : index
    %36 = vector.load %arg3[%c0_32, %c0_33, %c0_34] : memref<9x8x8xf32, #tpu.memory_space<vmem>>, vector<1x8x8xf32>
    %37 = vector.shape_cast %36 : vector<1x8x8xf32> to vector<8x8xf32>
    %c0_35 = arith.constant 0 : index
    %c117_36 = arith.constant 117 : index
    %38 = vector.load %arg8[%c0_35, %c117_36] : memref<8x512xf32, #tpu.memory_space<vmem>>, vector<8x256xf32>
    %cst_37 = arith.constant dense<0.000000e+00> : vector<8x256xf32>
    %39 = tpu.matmul %37, %38, %cst_37 {dimension_numbers = #tpu.dot_dimension_numbers<[1], [0], [0], [1], [0, 0, 1, 1], [], []>} : vector<8x8xf32>, vector<8x256xf32>, vector<8x256xf32> -> vector<8x256xf32>
    %40 = arith.addf %35, %39 : vector<8x256xf32>
    %c1_38 = arith.constant 1 : index
    %c0_39 = arith.constant 0 : index
    %c0_40 = arith.constant 0 : index
    %41 = vector.load %arg3[%c1_38, %c0_39, %c0_40] : memref<9x8x8xf32, #tpu.memory_space<vmem>>, vector<1x8x8xf32>
    %42 = vector.shape_cast %41 : vector<1x8x8xf32> to vector<8x8xf32>
    %c0_41 = arith.constant 0 : index
    %c118_42 = arith.constant 118 : index
    %43 = vector.load %arg8[%c0_41, %c118_42] : memref<8x512xf32, #tpu.memory_space<vmem>>, vector<8x256xf32>
    %cst_43 = arith.constant dense<0.000000e+00> : vector<8x256xf32>
    %44 = tpu.matmul %42, %43, %cst_43 {dimension_numbers = #tpu.dot_dimension_numbers<[1], [0], [0], [1], [0, 0, 1, 1], [], []>} : vector<8x8xf32>, vector<8x256xf32>, vector<8x256xf32> -> vector<8x256xf32>
    %45 = arith.addf %40, %44 : vector<8x256xf32>
    %c2_44 = arith.constant 2 : index
    %c0_45 = arith.constant 0 : index
    %c0_46 = arith.constant 0 : index
    %46 = vector.load %arg3[%c2_44, %c0_45, %c0_46] : memref<9x8x8xf32, #tpu.memory_space<vmem>>, vector<1x8x8xf32>
    %47 = vector.shape_cast %46 : vector<1x8x8xf32> to vector<8x8xf32>
    %c0_47 = arith.constant 0 : index
    %c119 = arith.constant 119 : index
    %48 = vector.load %arg8[%c0_47, %c119] : memref<8x512xf32, #tpu.memory_space<vmem>>, vector<8x256xf32>
    %cst_48 = arith.constant dense<0.000000e+00> : vector<8x256xf32>
    %49 = tpu.matmul %47, %48, %cst_48 {dimension_numbers = #tpu.dot_dimension_numbers<[1], [0], [0], [1], [0, 0, 1, 1], [], []>} : vector<8x8xf32>, vector<8x256xf32>, vector<8x256xf32> -> vector<8x256xf32>
    %50 = arith.addf %45, %49 : vector<8x256xf32>
    %c3_49 = arith.constant 3 : index
    %c0_50 = arith.constant 0 : index
    %c0_51 = arith.constant 0 : index
    %51 = vector.load %arg3[%c3_49, %c0_50, %c0_51] : memref<9x8x8xf32, #tpu.memory_space<vmem>>, vector<1x8x8xf32>
    %52 = vector.shape_cast %51 : vector<1x8x8xf32> to vector<8x8xf32>
    %c0_52 = arith.constant 0 : index
    %c127_53 = arith.constant 127 : index
    %53 = vector.load %arg8[%c0_52, %c127_53] : memref<8x512xf32, #tpu.memory_space<vmem>>, vector<8x256xf32>
    %cst_54 = arith.constant dense<0.000000e+00> : vector<8x256xf32>
    %54 = tpu.matmul %52, %53, %cst_54 {dimension_numbers = #tpu.dot_dimension_numbers<[1], [0], [0], [1], [0, 0, 1, 1], [], []>} : vector<8x8xf32>, vector<8x256xf32>, vector<8x256xf32> -> vector<8x256xf32>
    %55 = arith.addf %50, %54 : vector<8x256xf32>
    %c4 = arith.constant 4 : index
    %c0_55 = arith.constant 0 : index
    %c0_56 = arith.constant 0 : index
    %56 = vector.load %arg3[%c4, %c0_55, %c0_56] : memref<9x8x8xf32, #tpu.memory_space<vmem>>, vector<1x8x8xf32>
    %57 = vector.shape_cast %56 : vector<1x8x8xf32> to vector<8x8xf32>
    %c0_57 = arith.constant 0 : index
    %c128_58 = arith.constant 128 : index
    %58 = vector.load %arg8[%c0_57, %c128_58] : memref<8x512xf32, #tpu.memory_space<vmem>>, vector<8x256xf32>
    %cst_59 = arith.constant dense<0.000000e+00> : vector<8x256xf32>
    %59 = tpu.matmul %57, %58, %cst_59 {dimension_numbers = #tpu.dot_dimension_numbers<[1], [0], [0], [1], [0, 0, 1, 1], [], []>} : vector<8x8xf32>, vector<8x256xf32>, vector<8x256xf32> -> vector<8x256xf32>
    %60 = arith.addf %55, %59 : vector<8x256xf32>
    %c5 = arith.constant 5 : index
    %c0_60 = arith.constant 0 : index
    %c0_61 = arith.constant 0 : index
    %61 = vector.load %arg3[%c5, %c0_60, %c0_61] : memref<9x8x8xf32, #tpu.memory_space<vmem>>, vector<1x8x8xf32>
    %62 = vector.shape_cast %61 : vector<1x8x8xf32> to vector<8x8xf32>
    %c0_62 = arith.constant 0 : index
    %c129 = arith.constant 129 : index
    %63 = vector.load %arg8[%c0_62, %c129] : memref<8x512xf32, #tpu.memory_space<vmem>>, vector<8x256xf32>
    %cst_63 = arith.constant dense<0.000000e+00> : vector<8x256xf32>
    %64 = tpu.matmul %62, %63, %cst_63 {dimension_numbers = #tpu.dot_dimension_numbers<[1], [0], [0], [1], [0, 0, 1, 1], [], []>} : vector<8x8xf32>, vector<8x256xf32>, vector<8x256xf32> -> vector<8x256xf32>
    %65 = arith.addf %60, %64 : vector<8x256xf32>
    %c6 = arith.constant 6 : index
    %c0_64 = arith.constant 0 : index
    %c0_65 = arith.constant 0 : index
    %66 = vector.load %arg3[%c6, %c0_64, %c0_65] : memref<9x8x8xf32, #tpu.memory_space<vmem>>, vector<1x8x8xf32>
    %67 = vector.shape_cast %66 : vector<1x8x8xf32> to vector<8x8xf32>
    %c0_66 = arith.constant 0 : index
    %c137 = arith.constant 137 : index
    %68 = vector.load %arg8[%c0_66, %c137] : memref<8x512xf32, #tpu.memory_space<vmem>>, vector<8x256xf32>
    %cst_67 = arith.constant dense<0.000000e+00> : vector<8x256xf32>
    %69 = tpu.matmul %67, %68, %cst_67 {dimension_numbers = #tpu.dot_dimension_numbers<[1], [0], [0], [1], [0, 0, 1, 1], [], []>} : vector<8x8xf32>, vector<8x256xf32>, vector<8x256xf32> -> vector<8x256xf32>
    %70 = arith.addf %65, %69 : vector<8x256xf32>
    %c7 = arith.constant 7 : index
    %c0_68 = arith.constant 0 : index
    %c0_69 = arith.constant 0 : index
    %71 = vector.load %arg3[%c7, %c0_68, %c0_69] : memref<9x8x8xf32, #tpu.memory_space<vmem>>, vector<1x8x8xf32>
    %72 = vector.shape_cast %71 : vector<1x8x8xf32> to vector<8x8xf32>
    %c0_70 = arith.constant 0 : index
    %c138 = arith.constant 138 : index
    %73 = vector.load %arg8[%c0_70, %c138] : memref<8x512xf32, #tpu.memory_space<vmem>>, vector<8x256xf32>
    %cst_71 = arith.constant dense<0.000000e+00> : vector<8x256xf32>
    %74 = tpu.matmul %72, %73, %cst_71 {dimension_numbers = #tpu.dot_dimension_numbers<[1], [0], [0], [1], [0, 0, 1, 1], [], []>} : vector<8x8xf32>, vector<8x256xf32>, vector<8x256xf32> -> vector<8x256xf32>
    %75 = arith.addf %70, %74 : vector<8x256xf32>
    %c8 = arith.constant 8 : index
    %c0_72 = arith.constant 0 : index
    %c0_73 = arith.constant 0 : index
    %76 = vector.load %arg3[%c8, %c0_72, %c0_73] : memref<9x8x8xf32, #tpu.memory_space<vmem>>, vector<1x8x8xf32>
    %77 = vector.shape_cast %76 : vector<1x8x8xf32> to vector<8x8xf32>
    %c0_74 = arith.constant 0 : index
    %c139 = arith.constant 139 : index
    %78 = vector.load %arg8[%c0_74, %c139] : memref<8x512xf32, #tpu.memory_space<vmem>>, vector<8x256xf32>
    %cst_75 = arith.constant dense<0.000000e+00> : vector<8x256xf32>
    %79 = tpu.matmul %77, %78, %cst_75 {dimension_numbers = #tpu.dot_dimension_numbers<[1], [0], [0], [1], [0, 0, 1, 1], [], []>} : vector<8x8xf32>, vector<8x256xf32>, vector<8x256xf32> -> vector<8x256xf32>
    %80 = arith.addf %75, %79 : vector<8x256xf32>
    %c0_76 = arith.constant 0 : index
    %c1_77 = arith.constant 1 : index
    %81 = vector.load %arg5[%c0_76, %c1_77] : memref<8x2xf32, #tpu.memory_space<vmem>>, vector<8x1xf32>
    %82 = vector.broadcast %81 : vector<8x1xf32> to vector<8x256xf32>
    %83 = arith.addf %80, %82 : vector<8x256xf32>
    %cst_78 = arith.constant 0.000000e+00 : f32
    %84 = vector.broadcast %cst_78 : f32 to vector<8x256xf32>
    %85 = arith.maximumf %83, %84 : vector<8x256xf32>
    %c0_79 = arith.constant 0 : index
    %c0_80 = arith.constant 0 : index
    %c0_81 = arith.constant 0 : index
    %86 = vector.load %arg7[%c0_79, %c0_80, %c0_81] : memref<1x8x256xf32, #tpu.memory_space<vmem>>, vector<1x8x256xf32>
    %87 = vector.shape_cast %86 : vector<1x8x256xf32> to vector<8x256xf32>
    %88 = vector.shape_cast %85 : vector<8x256xf32> to vector<1x8x256xf32>
    tpu.vector_store %arg7[%c0_79, %c0_80, %c0_81], %88 {strides = array<i32>} : memref<1x8x256xf32, #tpu.memory_space<vmem>>, vector<1x8x256xf32>,
    return
  }
  func.func @transform_0(%arg0: i32) -> (i32, i32, i32) {
    %c0_i32 = arith.constant 0 : i32
    %c0_i32_0 = arith.constant 0 : i32
    %c0_i32_1 = arith.constant 0 : i32
    return %arg0, %c0_i32, %c0_i32_0 : i32, i32, i32
  }
  func.func @transform_1(%arg0: i32) -> (i32, i32, i32) {
    %c0_i32 = arith.constant 0 : i32
    %c0_i32_0 = arith.constant 0 : i32
    %c0_i32_1 = arith.constant 0 : i32
    %c0_i32_2 = arith.constant 0 : i32
    return %c0_i32, %c0_i32_0, %c0_i32_1 : i32, i32, i32
  }
  func.func @transform_2(%arg0: i32) -> (i32, i32, i32) {
    %c0_i32 = arith.constant 0 : i32
    %c0_i32_0 = arith.constant 0 : i32
    %c0_i32_1 = arith.constant 0 : i32
    %c0_i32_2 = arith.constant 0 : i32
    return %c0_i32, %c0_i32_0, %c0_i32_1 : i32, i32, i32
  }
  func.func @transform_3(%arg0: i32) -> (i32, i32) {
    %c0_i32 = arith.constant 0 : i32
    %c0_i32_0 = arith.constant 0 : i32
    %c0_i32_1 = arith.constant 0 : i32
    return %c0_i32, %c0_i32_0 : i32, i32
  }
  func.func @transform_4(%arg0: i32) -> (i32, i32) {
    %c0_i32 = arith.constant 0 : i32
    %c0_i32_0 = arith.constant 0 : i32
    %c0_i32_1 = arith.constant 0 : i32
    return %c0_i32, %c0_i32_0 : i32, i32
  }
  func.func @transform_5(%arg0: i32) -> (i32, i32) {
    %c0_i32 = arith.constant 0 : i32
    %c0_i32_0 = arith.constant 0 : i32
    %c0_i32_1 = arith.constant 0 : i32
    return %c0_i32, %c0_i32_0 : i32, i32
  }
  func.func @transform_6(%arg0: i32) -> (i32, i32, i32) {
    %c0_i32 = arith.constant 0 : i32
    %c0_i32_0 = arith.constant 0 : i32
    %c0_i32_1 = arith.constant 0 : i32
    return %arg0, %c0_i32, %c0_i32_0 : i32, i32, i32
  }
}

</mosaic_0001>

<bundles_post_ra>
// kernel: tpu_custom_call.1
= control target key start
LH: loop header
LB: loop body
LE: loop exit
PB: predicated region body
PF: predicated region fallthrough
CT: control target
= control target key end

     0   :  { %s1321_s0 = inlined_call_operand.vmem [shape: f32[1,16,512], index: 0, kind: input, shape index: {}]   ;;  %s1322_s1 = inlined_call_operand.vmem [shape: f32[4,8,16], index: 1, kind: input, shape index: {}]   ;;  %s1323_s2 = inlined_call_operand.vmem [shape: f32[9,8,8], index: 2, kind: input, shape index: {}]   ;;  %s1324_s3 = inlined_call_operand.vmem [shape: f32[8,16], index: 3, kind: input, shape index: {}]   ;;  %s1325_s4 = inlined_call_operand.vmem [shape: f32[8,2], index: 4, kind: input, shape index: {}]   ;;  %s1326_s5 = inlined_call_operand.vmem [shape: f32[1,256], index: 5, kind: input, shape index: {}]   ;;  %s1327_s6 = inlined_call_operand.hbm [shape: f32[1,8,256], index: 6, kind: output, shape index: {}]  }
   0x1   :  { %v28_v0 = vld [vmem:[%s1321_s0 + $0x20] sm:$0xff]  ;;  %v1155_v1 = vld [vmem:[%s1321_s0 + $0x28] sm:$0xff]  ;;  %v1166_v4 = vld [vmem:[%s1321_s0 + $0x10] sm:$0xff] }
   0x2   :  { %v1160_v2 = vld [vmem:[%s1321_s0 + $0x8] sm:$0xff]  ;;  %v975_v3 = vpack.i.bf16 %v1155_v1, %v28_v0  ;;  %v25_v5 = vld [vmem:[%s1321_s0] sm:$0xff]  ;;  %v1174_v6 = vld [vmem:[%s1321_s0 + $0x30] sm:$0xff] }
   0x3   :  { %v985_v7 = vpack.i.bf16 %v1166_v4, %v1160_v2  ;;  %v980_v8 = vpack.i.bf16 %v25_v5, %v1174_v6 }
   0x4   :  { %11 = vsyncpa [#allocation4], 0  ;;  %s1103_s9 = smov 11   ;;  %s1104_s10 = smov 10   ;;  %v1194_v9 = vld [vmem:[%s1325_s4] sm:$0xff]  ;;  %v1106_v10 = vmov 0  }
   0x5   :  { %976 = vrot.lane.b32.xlu0 %v975_v3, %s1103_s9  ;;  %986 = vrot.lane.b32.xlu1 %v985_v7, %s1103_s9  ;;  %s1105_s0 = smov 1   ;;  %vm116_vm0 = vcmask 89088   ;;  %vm51_vm1 = vcmask 80896   ;;  %v24_v32 = vld [vmem:[%s1322_s1] sm:$0xff]  ;;  %vm60_vm2 = vcmask 130048   ;;  %v925_v37 = vld [vmem:[%s1322_s1 + $0x8] sm:$0xff] }
   0x6   :  { %996 = vrot.lane.b32.xlu2 %v980_v8, %s1104_s10  ;;  %1020 = vset.pattern.permute.xlu0 %v1106_v10  ;;  %vm182_vm3 = vcmask 7168   ;;  %v933_v49 = vld [vmem:[%s1322_s1 + $0x18] sm:$0xff]  ;;  %v930_v53 = vld [vmem:[%s1322_s1 + $0x10] sm:$0xff]  ;;  %v293_v0 = vld [vmem:[%s1326_s5] sm:$0x3]  ;;  %s1107_s21 = smov 9  }
   0x7   :  { %s1108_s5 = smov 119   ;;  %s1109_s22 = smov 127   ;;  %vm327_vm4 = vcmask 64512   ;;  %vm505_vm5 = vcmask 72704   ;;  %vm731_vm6 = vcmask 973824   ;;  %vm847_vm7 = vcmask 957440  }
   0x8   :  { %s1110_s23 = smov 118   ;;  %s1111_s24 = smov 117   ;;  %vm673_vm8 = vcmask 1039360   ;;  %vm789_vm9 = vcmask 965632  }
   0x9   :  { %s916_s20 = sshll.u32 %s1327_s6, 4  ;;  %s917_s20 = int_to_ptr.hbm [resolvable:$true] %s916_s20 }
   0xd   :  { %981 = vrot.lane.b32.xlu0 %v980_v8, %s1103_s9  ;;  %991 = vrot.lane.b32.xlu1 %v975_v3, %s1104_s10 }
   0xe   :  { %1001 = vrot.lane.b32.xlu2 %v985_v7, %s1104_s10 }
  0x15   :  { %1006 = vrot.lane.b32.xlu0 %v975_v3, %s1105_s0  ;;  %1011 = vrot.lane.b32.xlu1 %v980_v8, %s1105_s0 }
  0x16   :  { %1016 = vrot.lane.b32.xlu2 %v985_v7, %s1105_s0 }
  0x1d   :  { %1022 = vrot.lane.b32.xlu1 %v975_v3, %s1103_s9  ;;  %286 = vperm.xlu0 %1020, %v1194_v9  }
  0x1e   :  { %1027 = vrot.lane.b32.xlu2 %v980_v8, %s1103_s9 }
  0x25   :  { %1032 = vrot.lane.b32.xlu1 %v985_v7, %s1103_s9 }
  0x60   :  { %v997_v11 = vpop.permute.xlu2 %996 }
  0x61   :  { %v999_v18 = vunpack.i.h.bf16 %v997_v11  ;;  %v998_v26 = vunpack.i.l.bf16 %v997_v11  ;;  %v296_v11 = vperm.slane %v293_v0, 1 }
  0x68   :  { %v1002_v17 = vpop.permute.xlu2 %1001 }
  0x69   :  { %v1004_v19 = vunpack.i.h.bf16 %v1002_v17  ;;  %v1003_v27 = vunpack.i.l.bf16 %v1002_v17  ;;  %v663_v17 = vld [vmem:[#allocation2 + $0x10] sm:$0xff] }
  0x6b   :  { %v53_v35 = vsel %vm51_vm1, %v1003_v27, %v1004_v19  ;;  %v52_v39 = vsel %vm51_vm1, %v999_v18, %v1003_v27 }
  0x70   :  { %v1017_v38 = vpop.permute.xlu2 %1016 }
  0x71   :  { %v1019_v41 = vunpack.i.h.bf16 %v1017_v38  ;;  %v1018_v42 = vunpack.i.l.bf16 %v1017_v38 }
  0x73   :  { %v184_v52 = vsel %vm182_vm3, %v1018_v42, %v1019_v41 }
  0x77   :  { %v977_v12 = vpop.permute.xlu0 %976  ;;  %v987_v15 = vpop.permute.xlu1 %986 }
  0x78   :  { %v979_v13 = vunpack.i.h.bf16 %v977_v12  ;;  %v978_v14 = vunpack.i.l.bf16 %v977_v12  ;;  %v989_v21 = vunpack.i.h.bf16 %v987_v15  ;;  %v988_v22 = vunpack.i.l.bf16 %v987_v15  ;;  %v311_v12 = vld [vmem:[#allocation2 + $0x18] sm:$0xff] }
  0x7a   :  { %v119_v16 = vsel %vm116_vm0, %v978_v14, %v979_v13  ;;  %v118_v36 = vsel %vm116_vm0, %v988_v22, %v989_v21 }
  0x7b   :  { %142 = vmatpush.msra.mxu2 %v119_v16 }
  0x7f   :  { %v982_v20 = vpop.permute.xlu0 %981  ;;  %v992_v23 = vpop.permute.xlu1 %991 }
  0x80   :  { %v984_v24 = vunpack.i.h.bf16 %v982_v20  ;;  %v983_v25 = vunpack.i.l.bf16 %v982_v20  ;;  %v994_v28 = vunpack.i.h.bf16 %v992_v23  ;;  %v993_v29 = vunpack.i.l.bf16 %v992_v23  ;;  %v1028_v20 = vpop.permute.xlu2 %1027 }
  0x81   :  { %v1029_v21 = vunpack.i.l.bf16 %v1028_v20 }
  0x82   :  { %v117_v30 = vsel %vm116_vm0, %v984_v24, %v988_v22  ;;  %v120_v31 = vsel %vm116_vm0, %v979_v13, %v983_v25  ;;  %v54_v33 = vsel %vm51_vm1, %v993_v29, %v994_v28  ;;  %v55_v34 = vsel %vm51_vm1, %v994_v28, %v998_v26 }
  0x83   :  { %143 = vmatpush.msra.mxu2 %v117_v30  ;;  %162 = vmatpush.msra.mxu3 %v120_v31  ;;  %v1030_v24 = vunpack.i.h.bf16 %v1028_v20 }
  0x84   :  { %78 = vmatpush.msra.mxu0 %v54_v33  ;;  %98 = vmatpush.msra.mxu1 %v55_v34 }
  0x85   :  { %928 = vmatmul.msk.f32.vlgmr.msra.gmra.mxu2 %vm60_vm2, %v24_v32  ;;  %163 = vmatpush.msra.mxu3 %v118_v36  ;;  %v310_v36 = vld [vmem:[%s1323_s2] sm:$0xff] }
  0x86   :  { %79 = vmatpush.msra.mxu0 %v52_v39  ;;  %99 = vmatpush.msra.mxu1 %v53_v35 }
  0x87   :  { %926 = vmatmul.msk.f32.vlgmr.msra.gmra.mxu0 %vm60_vm2, %v925_v37  ;;  %927 = vmatmul.msk.f32.vlgmr.msra.gmra.mxu1 %vm60_vm2, %v925_v37  ;;  %v1007_v40 = vpop.permute.xlu0 %1006  ;;  %v1012_v43 = vpop.permute.xlu1 %1011 }
  0x88   :  { %929 = vmatmul.msk.f32.vlgmr.msra.gmra.mxu3 %vm60_vm2, %v24_v32  ;;  %v1009_v44 = vunpack.i.h.bf16 %v1007_v40  ;;  %v1008_v45 = vunpack.i.l.bf16 %v1007_v40  ;;  %255 = vmatpush.msrb.mxu2 %v1155_v1  ;;  %v1014_v46 = vunpack.i.h.bf16 %v1012_v43  ;;  %v1013_v47 = vunpack.i.l.bf16 %v1012_v43  ;;  %v303_v32 = vld [vmem:[%s1324_s3] sm:$0xff] }
  0x89   :  { %275 = vmatpush.msrb.mxu3 %v1174_v6 }
  0x8a   :  { %v185_v48 = vsel %vm182_vm3, %v1008_v45, %v1009_v44  ;;  %256 = vmatpush.msrb.mxu2 %v1160_v2  ;;  %v186_v50 = vsel %vm182_vm3, %v1009_v44, %v1013_v47  ;;  %v183_v51 = vsel %vm182_vm3, %v1014_v46, %v1018_v42 }
  0x8b   :  { %208 = vmatpush.msrb.mxu0 %v185_v48  ;;  %276 = vmatpush.msrb.mxu3 %v1166_v4  ;;  %v295_v4 = vperm.slane %v293_v0, 0  ;;  %v943_v48 = vld [vmem:[%s1323_s2 + $0x10] sm:$0xff] }
  0x8c   :  { %228 = vmatpush.msrb.mxu1 %v186_v50 }
  0x8d   :  { %934 = vmatmul.msk.f32.vlgmr.msrb.gmra.mxu2 %vm60_vm2, %v933_v49  ;;  %209 = vmatpush.msrb.mxu0 %v183_v51 }
  0x8e   :  { %229 = vmatpush.msrb.mxu1 %v184_v52 }
  0x8f   :  { %931 = vmatmul.msk.f32.vlgmr.msrb.gmra.mxu0 %vm60_vm2, %v930_v53  ;;  %932 = vmatmul.msk.f32.vlgmr.msrb.gmra.mxu1 %vm60_vm2, %v930_v53  ;;  %v287_v1 = vpop.permute.xlu0 %286  ;;  %v1023_v19 = vpop.permute.xlu1 %1022 }
  0x90   :  { %935 = vmatmul.msk.f32.vlgmr.msrb.gmra.mxu3 %vm60_vm2, %v933_v49  ;;  %v1025_v22 = vunpack.i.h.bf16 %v1023_v19  ;;  %v1024_v23 = vunpack.i.l.bf16 %v1023_v19  ;;  %v1112_v49 = vmov 1  }
  0x91   :  { %1076 = vset.pattern.permute.xlu0 %v1112_v49 }
  0x92   :  { %v391_v25 = vsel %vm116_vm0, %v1024_v23, %v1025_v22  ;;  %v392_v26 = vsel %vm116_vm0, %v1025_v22, %v1029_v21 }
  0x93   :  { %414 = vmatpush.msra.mxu2 %v391_v25  ;;  %434 = vmatpush.msra.mxu3 %v392_v26  ;;  %v958_v26 = vld [vmem:[%s1323_s2 + $0x38] sm:$0xff] }
  0x97   :  { %v1033_v27 = vpop.permute.xlu1 %1032 }
  0x98   :  { %v1034_v28 = vunpack.i.l.bf16 %v1033_v27  ;;  %v1035_v29 = vunpack.i.h.bf16 %v1033_v27 }
  0x9a   :  { %v389_v30 = vsel %vm116_vm0, %v1030_v24, %v1034_v28  ;;  %v390_v31 = vsel %vm116_vm0, %v1034_v28, %v1035_v29 }
  0x9b   :  { %415 = vmatpush.msra.mxu2 %v389_v30  ;;  %435 = vmatpush.msra.mxu3 %v390_v31 }
  0x9c   :  { %938 = vmatmul.msk.f32.vlgmr.msra.gmra.mxu2 %vm60_vm2, %v303_v32  ;;  %939 = vmatmul.msk.f32.vlgmr.msra.gmra.mxu3 %vm60_vm2, %v303_v32 }
 0x104   :  { %v81_v54 = vpop.f32.mrf.mxu0  ;;  %v101_v55 = vpop.f32.mrf.mxu1 }
 0x108   :  { %v145_v56 = vpop.f32.mrf.mxu2 }
 0x109   :  { %v146_v59 = vadd.f32 %v145_v56, %v81_v54  ;;  %v940_v56 = vld [vmem:[%s1323_s2 + $0x8] sm:$0xff] }
 0x10b   :  { %v165_v57 = vpop.f32.mrf.mxu3 }
 0x10c   :  { %v211_v58 = vpop.f32.mrf.mxu0  ;;  %v166_v60 = vadd.f32 %v165_v57, %v101_v55  ;;  %v231_v62 = vpop.f32.mrf.mxu1 }
 0x10d   :  { %v234_v61 = vadd.f32 %v211_v58, %v146_v59  ;;  %v949_v59 = vld [vmem:[%s1323_s2 + $0x20] sm:$0xff] }
 0x10e   :  { %v235_v3 = vadd.f32 %v231_v62, %v166_v60 }
 0x110   :  { %v258_v63 = vpop.f32.mrf.mxu2 }
 0x111   :  { %v281_v2 = vadd.f32 %v258_v63, %v234_v61 }
 0x113   :  { %v289_v5 = vadd.f32 %v287_v1, %v281_v2  ;;  %v278_v6 = vpop.f32.mrf.mxu3 }
 0x114   :  { %v282_v7 = vadd.f32 %v278_v6, %v235_v3  ;;  %v946_v6 = vld [vmem:[%s1323_s2 + $0x18] sm:$0xff] }
 0x115   :  { %v291_v8 = vmax.f32 %v289_v5, 0.0 }
 0x116   :  { %v290_v10 = vadd.f32 %v287_v1, %v282_v7 }
 0x117   :  { %v1236_v13 = vmul.f32 %v295_v4, %v291_v8  ;;  %v955_v8 = vld [vmem:[%s1323_s2 + $0x30] sm:$0xff] }
 0x118   :  { %v292_v14 = vmax.f32 %v290_v10, 0.0 }
 0x119   :  { %v1041_v15 = vpack.i.bf16 %v1236_v13, %v311_v12 }
 0x11a   :  { %v1239_v16 = vmul.f32 %v296_v11, %v292_v14  ;;  %v952_v14 = vld [vmem:[%s1323_s2 + $0x28] sm:$0xff] }
 0x11b   :  { %1042 = vrot.lane.b32.xlu1 %v1041_v15, %s1107_s21  ;;  %1037 = vrot.lane.b32.xlu2 %v1041_v15, %s1103_s9 }
 0x11c   :  { %321 = vrot.lane.b32.xlu0 %v1239_v16, %s1103_s9  ;;  %v1056_v18 = vpack.i.bf16 %v1239_v16, %v1236_v13 }
 0x11f   :  { %v417_v27 = vpop.f32.mrf.mxu2  ;;  %v437_v28 = vpop.f32.mrf.mxu3 }
 0x123   :  { %446 = vrot.lane.b32.xlu1 %v1239_v16, %s1104_s10  ;;  %503 = vrot.lane.b32.xlu2 %v1239_v16, %s1107_s21 }
 0x124   :  { %1047 = vrot.lane.b32.xlu0 %v1041_v15, %s1104_s10 }
 0x12b   :  { %1057 = vrot.lane.b32.xlu1 %v1056_v18, %s1108_s5  ;;  %729 = vrot.lane.b32.xlu2 %v663_v17, %s1108_s5 }
 0x12c   :  { %561 = vrot.lane.b32.xlu0 %v1239_v16, %s1105_s0 }
 0x133   :  { %671 = vrot.lane.b32.xlu1 %v663_v17, %s1109_s22  ;;  %1052 = vrot.lane.b32.xlu2 %v1041_v15, %s1105_s0 }
 0x134   :  { %1062 = vrot.lane.b32.xlu0 %v1056_v18, %s1109_s22 }
 0x13b   :  { %1072 = vrot.lane.b32.xlu1 %v1056_v18, %s1110_s23  ;;  %1067 = vrot.lane.b32.xlu2 %v1056_v18, %s1111_s24 }
 0x13c   :  { %845 = vrot.lane.b32.xlu0 %v663_v17, %s1111_s24 }
 0x143   :  { %787 = vrot.lane.b32.xlu2 %v663_v17, %s1110_s23  ;;  %v961_v17 = vld [vmem:[%s1323_s2 + $0x40] sm:$0xff]  ;;  %s1113_s2 = smov [#allocation3]  }
 0x144   :  { %900 = vperm.xlu0 %1076, %v1194_v9   ;;  %s914_s18 = sshll.u32 %s1113_s2, 4  ;;  %s915_s18 = int_to_ptr.vmem [resolvable:$true] %s914_s18 }
 0x175   :  { %v1038_v33 = vpop.permute.xlu2 %1037 }
 0x176   :  { %v1040_v34 = vunpack.i.h.bf16 %v1038_v33  ;;  %v1039_v35 = vunpack.i.l.bf16 %v1038_v33 }
 0x178   :  { %v323_v37 = vsel %vm116_vm0, %v1039_v35, %v1040_v34 }
 0x179   :  { %346 = vmatpush.msra.mxu0 %v323_v37 }
 0x17a   :  { %936 = vmatmul.msk.f32.vlgmr.msra.gmra.mxu0 %vm327_vm4, %v310_v36 }
 0x17d   :  { %v504_v38 = vpop.permute.xlu2 %503 }
 0x185   :  { %v730_v39 = vpop.permute.xlu2 %729 }
 0x18d   :  { %v1043_v40 = vpop.permute.xlu1 %1042  ;;  %v1053_v45 = vpop.permute.xlu2 %1052 }
 0x18e   :  { %v322_v41 = vpop.permute.xlu0 %321  ;;  %v1045_v42 = vunpack.i.h.bf16 %v1043_v40  ;;  %v1044_v43 = vunpack.i.l.bf16 %v1043_v40  ;;  %v1055_v52 = vunpack.i.h.bf16 %v1053_v45  ;;  %v1054_v53 = vunpack.i.l.bf16 %v1053_v45 }
 0x18f   :  { %v324_v44 = vsel %vm116_vm0, %v1040_v34, %v322_v41 }
 0x190   :  { %366 = vmatpush.msra.mxu1 %v324_v44  ;;  %v506_v46 = vsel %vm505_vm5, %v1044_v43, %v1045_v42  ;;  %v507_v47 = vsel %vm505_vm5, %v1045_v42, %v504_v38  ;;  %v563_v9 = vsel %vm182_vm3, %v1054_v53, %v1055_v52 }
 0x191   :  { %528 = vmatpush.msrb.mxu2 %v506_v46  ;;  %548 = vmatpush.msrb.mxu3 %v507_v47 }
 0x192   :  { %937 = vmatmul.msk.f32.vlgmr.msra.gmra.mxu1 %vm327_vm4, %v310_v36  ;;  %944 = vmatmul.msk.f32.vlgmr.msrb.gmra.mxu2 %vm327_vm4, %v943_v48 }
 0x193   :  { %632 = vmatpush.msra.mxu2 %v1236_v13  ;;  %652 = vmatpush.msra.mxu3 %v1239_v16 }
 0x194   :  { %945 = vmatmul.msk.f32.vlgmr.msrb.gmra.mxu3 %vm327_vm4, %v943_v48 }
 0x195   :  { %v447_v50 = vpop.permute.xlu1 %446  ;;  %v1068_v60 = vpop.permute.xlu2 %1067 }
 0x196   :  { %v1048_v51 = vpop.permute.xlu0 %1047  ;;  %v1070_v61 = vunpack.i.h.bf16 %v1068_v60  ;;  %v1069_v62 = vunpack.i.l.bf16 %v1068_v60 }
 0x197   :  { %v1050_v54 = vunpack.i.h.bf16 %v1048_v51  ;;  %v1049_v55 = vunpack.i.l.bf16 %v1048_v51 }
 0x198   :  { %v848_v7 = vsel %vm847_vm7, %v1069_v62, %v1070_v61 }
 0x199   :  { %v449_v57 = vsel %vm51_vm1, %v1050_v54, %v447_v50  ;;  %v448_v58 = vsel %vm51_vm1, %v1049_v55, %v1050_v54 }
 0x19a   :  { %470 = vmatpush.msrb.mxu0 %v448_v58  ;;  %490 = vmatpush.msrb.mxu1 %v449_v57 }
 0x19b   :  { %941 = vmatmul.msk.f32.vlgmr.msrb.gmra.mxu0 %vm327_vm4, %v940_v56  ;;  %942 = vmatmul.msk.f32.vlgmr.msrb.gmra.mxu1 %vm327_vm4, %v940_v56 }
 0x19c   :  { %585 = vmatpush.msra.mxu0 %v563_v9  ;;  %950 = vmatmul.msk.f32.vlgmr.msra.gmra.mxu2 %vm327_vm4, %v949_v59 }
 0x19d   :  { %v1058_v63 = vpop.permute.xlu1 %1057  ;;  %951 = vmatmul.msk.f32.vlgmr.msra.gmra.mxu3 %vm327_vm4, %v949_v59  ;;  %v788_v19 = vpop.permute.xlu2 %787 }
 0x19e   :  { %v562_v0 = vpop.permute.xlu0 %561  ;;  %v1060_v1 = vunpack.i.h.bf16 %v1058_v63  ;;  %v1059_v2 = vunpack.i.l.bf16 %v1058_v63 }
 0x19f   :  { %v564_v3 = vsel %vm182_vm3, %v1055_v52, %v562_v0 }
 0x1a0   :  { %605 = vmatpush.msra.mxu1 %v564_v3  ;;  %v732_v4 = vsel %vm731_vm6, %v1059_v2, %v1060_v1  ;;  %v733_v5 = vsel %vm731_vm6, %v1060_v1, %v730_v39 }
 0x1a1   :  { %754 = vmatpush.msrb.mxu2 %v732_v4  ;;  %774 = vmatpush.msrb.mxu3 %v733_v5 }
 0x1a3   :  { %870 = vmatpush.msra.mxu2 %v848_v7  ;;  %947 = vmatmul.msk.f32.vlgmr.msra.gmra.mxu0 %vm327_vm4, %v946_v6 }
 0x1a4   :  { %948 = vmatmul.msk.f32.vlgmr.msra.gmra.mxu1 %vm327_vm4, %v946_v6  ;;  %956 = vmatmul.msk.f32.vlgmr.msrb.gmra.mxu2 %vm327_vm4, %v955_v8 }
 0x1a5   :  { %v672_v10 = vpop.permute.xlu1 %671  ;;  %957 = vmatmul.msk.f32.vlgmr.msrb.gmra.mxu3 %vm327_vm4, %v955_v8 }
 0x1a6   :  { %v1063_v11 = vpop.permute.xlu0 %1062 }
 0x1a7   :  { %v1065_v12 = vunpack.i.h.bf16 %v1063_v11  ;;  %v1064_v13 = vunpack.i.l.bf16 %v1063_v11 }
 0x1a9   :  { %v675_v15 = vsel %vm673_vm8, %v1065_v12, %v672_v10  ;;  %v674_v16 = vsel %vm673_vm8, %v1064_v13, %v1065_v12 }
 0x1aa   :  { %696 = vmatpush.msrb.mxu0 %v674_v16  ;;  %716 = vmatpush.msrb.mxu1 %v675_v15 }
 0x1ab   :  { %953 = vmatmul.msk.f32.vlgmr.msrb.gmra.mxu0 %vm327_vm4, %v952_v14 }
 0x1ac   :  { %954 = vmatmul.msk.f32.vlgmr.msrb.gmra.mxu1 %vm327_vm4, %v952_v14  ;;  %962 = vmatmul.msk.f32.vlgmr.msra.gmra.mxu2 %vm327_vm4, %v961_v17 }
 0x1ad   :  { %v1073_v18 = vpop.permute.xlu1 %1072 }
 0x1ae   :  { %v846_v20 = vpop.permute.xlu0 %845  ;;  %v1075_v21 = vunpack.i.h.bf16 %v1073_v18  ;;  %v1074_v22 = vunpack.i.l.bf16 %v1073_v18 }
 0x1af   :  { %v849_v23 = vsel %vm847_vm7, %v1070_v61, %v846_v20 }
 0x1b0   :  { %v791_v24 = vsel %vm789_vm9, %v1075_v21, %v788_v19  ;;  %890 = vmatpush.msra.mxu3 %v849_v23  ;;  %v790_v25 = vsel %vm789_vm9, %v1074_v22, %v1075_v21 }
 0x1b1   :  { %963 = vmatmul.msk.f32.vlgmr.msra.gmra.mxu3 %vm327_vm4, %v961_v17  ;;  %812 = vmatpush.msra.mxu0 %v790_v25 }
 0x1b2   :  { %832 = vmatpush.msra.mxu1 %v791_v24 }
 0x1b3   :  { %959 = vmatmul.msk.f32.vlgmr.msra.gmra.mxu0 %vm327_vm4, %v958_v26 }
 0x1b4   :  { %960 = vmatmul.msk.f32.vlgmr.msra.gmra.mxu1 %vm327_vm4, %v958_v26 }
 0x1b6   :  { %v901_v9 = vpop.permute.xlu0 %900 }
 0x1f7   :  { %v348_v29 = vpop.f32.mrf.mxu0 }
 0x1f8   :  { %v418_v35 = vadd.f32 %v417_v27, %v348_v29 }
 0x20f   :  { %v368_v30 = vpop.f32.mrf.mxu1 }
 0x210   :  { %v438_v36 = vadd.f32 %v437_v28, %v368_v30 }
 0x215   :  { %v530_v31 = vpop.f32.mrf.mxu2 }
 0x217   :  { %v550_v32 = vpop.f32.mrf.mxu3 }
 0x218   :  { %v472_v33 = vpop.f32.mrf.mxu0  ;;  %v492_v34 = vpop.f32.mrf.mxu1 }
 0x219   :  { %v495_v37 = vadd.f32 %v472_v33, %v418_v35  ;;  %v496_v41 = vadd.f32 %v492_v34, %v438_v36 }
 0x21b   :  { %v553_v43 = vadd.f32 %v530_v31, %v495_v37  ;;  %v554_v44 = vadd.f32 %v550_v32, %v496_v41 }
 0x21f   :  { %v634_v38 = vpop.f32.mrf.mxu2 }
 0x220   :  { %v587_v39 = vpop.f32.mrf.mxu0  ;;  %v654_v42 = vpop.f32.mrf.mxu3 }
 0x221   :  { %v607_v40 = vpop.f32.mrf.mxu1  ;;  %v610_v45 = vadd.f32 %v587_v39, %v553_v43 }
 0x222   :  { %v611_v46 = vadd.f32 %v607_v40, %v554_v44 }
 0x223   :  { %v657_v50 = vadd.f32 %v634_v38, %v610_v45 }
 0x224   :  { %v658_v51 = vadd.f32 %v654_v42, %v611_v46 }
 0x227   :  { %v756_v47 = vpop.f32.mrf.mxu2 }
 0x228   :  { %v698_v48 = vpop.f32.mrf.mxu0  ;;  %v776_v53 = vpop.f32.mrf.mxu3 }
 0x229   :  { %v718_v49 = vpop.f32.mrf.mxu1  ;;  %v721_v52 = vadd.f32 %v698_v48, %v657_v50 }
 0x22a   :  { %v722_v54 = vadd.f32 %v718_v49, %v658_v51 }
 0x22b   :  { %v779_v55 = vadd.f32 %v756_v47, %v721_v52 }
 0x22c   :  { %v780_v59 = vadd.f32 %v776_v53, %v722_v54 }
 0x22f   :  { %v872_v56 = vpop.f32.mrf.mxu2 }
 0x230   :  { %v814_v57 = vpop.f32.mrf.mxu0 }
 0x231   :  { %v834_v58 = vpop.f32.mrf.mxu1  ;;  %v837_v60 = vadd.f32 %v814_v57, %v779_v55 }
 0x232   :  { %v838_v61 = vadd.f32 %v834_v58, %v780_v59 }
 0x233   :  { %v895_v62 = vadd.f32 %v872_v56, %v837_v60 }
 0x234   :  { %v892_v63 = vpop.f32.mrf.mxu3 }
 0x235   :  { %v903_v0 = vadd.f32 %v901_v9, %v895_v62  ;;  %v896_v1 = vadd.f32 %v892_v63, %v838_v61 }
 0x237   :  { %v905_v2 = vmax.f32 %v903_v0, 0.0  ;;  %v904_v3 = vadd.f32 %v901_v9, %v896_v1 }
 0x239   :  { %907 = vst [vmem:[#allocation3] sm:$0xff] %v905_v2  ;;  %v906_v4 = vmax.f32 %v904_v3, 0.0 }
 0x23b   :  { %908 = vst [vmem:[#allocation3 + $0x8] sm:$0xff] %v906_v4 }
 0x23c   :  { %919 = dma.vmem_to_hbm [thread:$0]  %s915_s18, 256, %s917_s20, [#allocation4]  }
 0x23d   :  { %1101 = dma.done.wait [#allocation4], 256  }
 0x23e   :  { %1102 = vsyncadd [#allocation4], 4294967040 }
 0x23f   :  { %924 = vsyncpa [#allocation4], 1 }

</bundles_post_ra>
